<compile_context>
chip_gen: v7x
topology: tpu7x:2x2x1
jax: 0.10.0
libtpu: 0.0.40
codegen_flags: <defaults>
</compile_context>

<pallas_src>
import functools

import jax
import jax.numpy as jnp
from jax.experimental import pallas as pl
from jax.experimental.pallas import tpu as pltpu


def _round_up(x, m):
    return (x + m - 1) // m * m


def peep_lstm_kernel(ids_ref, zs_ref, wc_ref, wp_ref, bp_ref, out_ref, *,
                     seq_len, hidden_dim, num_classes):
    """Whole-sequence peephole-LSTM recurrence, single invocation.

    ids_ref: [T, Bp, 1]  int32 token ids in {0,1,2} (batch sublane-padded)
    zs_ref:  [8, 4H]     per-token x-side gate pre-activations (emb@Wx + b),
                         rows 3..7 are zero padding; columns stacked [i|f|o|g]
    wc_ref:  [H, 4H]     peephole weights on c, stacked [i|f|o|0]
    wp_ref:  [H, Cp]     output projection (lane-padded)
    bp_ref:  [1, Cp]     output bias (lane-padded)
    out_ref: [Bp, Cp]    log-softmax output; only [:B, :C] is meaningful
    """
    T = seq_len
    H = hidden_dim
    G = 4 * H
    Bp = out_ref.shape[0]

    wc = wc_ref[...]                                    # resident [H, 4H]

    # Hoisted sublane-broadcasts of the 3 token rows (JAX doesn't CSE
    # broadcast_in_dim, so do it once, outside the loop).
    z_tok0 = jnp.broadcast_to(zs_ref[0:1, :], (Bp, G))
    z_tok1 = jnp.broadcast_to(zs_ref[1:2, :], (Bp, G))
    z_tok2 = jnp.broadcast_to(zs_ref[2:3, :], (Bp, G))

    # Form every step's x-side pre-activation up front: depends only on ids,
    # so it lives off the recurrent chain and overlaps with the per-step matmuls.
    z_steps = []
    for t in range(T):
        idv = ids_ref[t]                                # [Bp, 1] int32
        zt = jnp.where(idv == 1, z_tok1, z_tok2)        # two VPU selects
        zt = jnp.where(idv == 0, z_tok0, zt)            # (vocab == 3)
        z_steps.append(zt)                              # [Bp, 4H]

    # Cell state and last output gate carried in vregs (tiny: [Bp, H]).
    c = jnp.zeros((Bp, H), jnp.float32)
    o = jnp.zeros((Bp, H), jnp.float32)

    # T is small and static -> fully unrolled; switch to lax.fori_loop with a
    # modest unroll if T grows past ~32-64.
    for t in range(T):
        a = z_steps[t] + jnp.dot(c, wc, preferred_element_type=jnp.float32)  # [Bp, 4H]
        # One full-128-lane EUP pass instead of four 32-lane slices. Exact:
        # the zero g-block of wc makes a[:, 3H:4H] equal the x-side term.
        s = jax.nn.sigmoid(a)
        i = s[:, 0 * H:1 * H]
        f = s[:, 1 * H:2 * H]
        o = s[:, 2 * H:3 * H]
        g = s[:, 3 * H:4 * H]                           # == linear_c(x_t)
        c = g * i + c * f

    h = jnp.tanh(c) * o                                                     # [Bp, H]
    p = jnp.tanh(jnp.dot(h, wp_ref[...], preferred_element_type=jnp.float32)
                 + bp_ref[...])                                             # [Bp, Cp]

    # Masked log-softmax over the real class columns only (padded cols -> -1e30).
    col = jax.lax.broadcasted_iota(jnp.int32, p.shape, 1)
    p = jnp.where(col < num_classes, p, jnp.float32(-1e30))
    m = jnp.max(p, axis=-1, keepdims=True)
    lse = m + jnp.log(jnp.sum(jnp.exp(p - m), axis=-1, keepdims=True))
    out_ref[...] = p - lse


@jax.jit
def peep_lstm_forward(x_ids, emb_table, wx, bx, wc, wp, bp):
    """x_ids: [B, T, 1] int32 token ids in {0, 1, 2}."""
    B, T, _ = x_ids.shape
    H = wc.shape[0]
    C = wp.shape[1]

    Bp = _round_up(B, 8)      # sublane-pad batch
    Cp = _round_up(C, 128)    # lane-pad classes

    # Fold embedding + x-side projection + bias into a 3-row table; the gather
    # over tokens happens inside the kernel (no [T, Bp, 4H] materialization).
    zs = emb_table @ wx + bx                                   # [3, 4H]
    zs_pad = jnp.pad(zs, ((0, 8 - zs.shape[0]), (0, 0)))       # [8, 4H]

    ids = x_ids[:, :, 0].astype(jnp.int32).T                   # [T, B] (tiny int transpose)
    ids = jnp.pad(ids, ((0, 0), (0, Bp - B)))[:, :, None]      # [T, Bp, 1]

    wc_pad = jnp.pad(wc, ((0, 0), (0, H)))                     # [H, 4H]: zero g block
    wp_pad = jnp.pad(wp, ((0, 0), (0, Cp - C)))                # [H, Cp]
    bp_pad = jnp.pad(bp, ((0, 0), (0, Cp - C)))                # [1, Cp]

    kernel = functools.partial(peep_lstm_kernel,
                               seq_len=T, hidden_dim=H, num_classes=C)

    out_pad = pl.pallas_call(
        kernel,
        out_shape=jax.ShapeDtypeStruct((Bp, Cp), jnp.float32),
        in_specs=[pl.BlockSpec(memory_space=pltpu.MemorySpace.VMEM)] * 5,
        out_specs=pl.BlockSpec(memory_space=pltpu.MemorySpace.VMEM),
    )(ids, zs_pad, wc_pad, wp_pad, bp_pad)

    return out_pad[:B, :C]


def reference_forward(x_ids, emb_table, wx, bx, wc, wp, bp):
    """Pure-JAX reference mirroring the torch forward."""
    B, T, _ = x_ids.shape
    H = wc.shape[0]
    c = jnp.zeros((B, H), jnp.float32)
    h = None
    for t in range(T):
        xt = emb_table[x_ids[:, t, 0]]
        z = xt @ wx + bx
        peep = c @ wc
        i = jax.nn.sigmoid(z[:, 0 * H:1 * H] + peep[:, 0 * H:1 * H])
        f = jax.nn.sigmoid(z[:, 1 * H:2 * H] + peep[:, 1 * H:2 * H])
        o = jax.nn.sigmoid(z[:, 2 * H:3 * H] + peep[:, 2 * H:3 * H])
        g = jax.nn.sigmoid(z[:, 3 * H:4 * H])
        c = g * i + c * f
        h = jnp.tanh(c) * o
    p = jnp.tanh(h @ wp + bp)
    return jax.nn.log_softmax(p, axis=-1)


if __name__ == "__main__":
    # Small shapes consistent with the module.
    B, T, E, H, C = 4, 8, 2, 32, 10   # batch, seq_length, embedding_dim, hidden_dim, num_classes

    key = jax.random.PRNGKey(0)
    k_ids, k_emb, k_wx, k_bx, k_wc, k_wp, k_bp = jax.random.split(key, 7)

    x_ids = jax.random.randint(k_ids, (B, T, 1), 0, 3, dtype=jnp.int32)
    emb_table = jax.random.normal(k_emb, (3, E), jnp.float32)
    wx = jax.random.normal(k_wx, (E, 4 * H), jnp.float32) / jnp.sqrt(E)
    bx = 0.01 * jax.random.normal(k_bx, (1, 4 * H), jnp.float32)
    wc = jax.random.normal(k_wc, (H, 3 * H), jnp.float32) / jnp.sqrt(H)
    wp = jax.random.normal(k_wp, (H, C), jnp.float32) / jnp.sqrt(H)
    bp = 0.01 * jax.random.normal(k_bp, (1, C), jnp.float32)

    out = peep_lstm_forward(x_ids, emb_table, wx, bx, wc, wp, bp)
    out = jax.block_until_ready(out)

    ref = reference_forward(x_ids, emb_table, wx, bx, wc, wp, bp)
    assert out.shape == (B, C)
    assert jnp.allclose(out, ref, atol=1e-5, rtol=1e-5), "mismatch vs JAX reference"
    # Sanity: rows are valid log-probability distributions.
    assert jnp.allclose(jnp.sum(jnp.exp(out), axis=-1), 1.0, atol=1e-5)

    print("KERNEL_OK")
</pallas_src>

<mosaic_0001>
module attributes {stable_mosaic.version = 11 : i64} {
  func.func @peep_lstm_kernel(%arg0: memref<8x8x1xi32, #tpu.memory_space<vmem>>, %arg1: memref<8x128xf32, #tpu.memory_space<vmem>>, %arg2: memref<32x128xf32, #tpu.memory_space<vmem>>, %arg3: memref<32x128xf32, #tpu.memory_space<vmem>>, %arg4: memref<1x128xf32, #tpu.memory_space<vmem>>, %arg5: memref<8x128xf32, #tpu.memory_space<vmem>>) attributes {dimension_semantics = [], scalar_prefetch = 0 : i64, scratch_operands = 0 : i64, tpu.core_type = #tpu.core_type<tc>} {
    %c0 = arith.constant 0 : index
    %c0_0 = arith.constant 0 : index
    %0 = vector.load %arg2[%c0, %c0_0] : memref<32x128xf32, #tpu.memory_space<vmem>>, vector<32x128xf32>
    %c0_1 = arith.constant 0 : index
    %c0_2 = arith.constant 0 : index
    %1 = vector.load %arg1[%c0_1, %c0_2] : memref<8x128xf32, #tpu.memory_space<vmem>>, vector<1x128xf32>
    %2 = vector.shape_cast %1 : vector<1x128xf32> to vector<1x128xf32>
    %3 = vector.broadcast %2 : vector<1x128xf32> to vector<8x128xf32>
    %c1 = arith.constant 1 : index
    %c0_3 = arith.constant 0 : index
    %4 = vector.load %arg1[%c1, %c0_3] : memref<8x128xf32, #tpu.memory_space<vmem>>, vector<1x128xf32>
    %5 = vector.shape_cast %4 : vector<1x128xf32> to vector<1x128xf32>
    %6 = vector.broadcast %5 : vector<1x128xf32> to vector<8x128xf32>
    %c2 = arith.constant 2 : index
    %c0_4 = arith.constant 0 : index
    %7 = vector.load %arg1[%c2, %c0_4] : memref<8x128xf32, #tpu.memory_space<vmem>>, vector<1x128xf32>
    %8 = vector.shape_cast %7 : vector<1x128xf32> to vector<1x128xf32>
    %9 = vector.broadcast %8 : vector<1x128xf32> to vector<8x128xf32>
    %c0_5 = arith.constant 0 : index
    %c0_6 = arith.constant 0 : index
    %c0_7 = arith.constant 0 : index
    %10 = vector.load %arg0[%c0_5, %c0_6, %c0_7] : memref<8x8x1xi32, #tpu.memory_space<vmem>>, vector<1x8x1xi32>
    %11 = vector.shape_cast %10 : vector<1x8x1xi32> to vector<8x1xi32>
    %c1_i32 = arith.constant 1 : i32
    %12 = vector.broadcast %c1_i32 : i32 to vector<8x1xi32>
    %13 = arith.cmpi eq, %11, %12 : vector<8x1xi32>
    %14 = vector.shape_cast %13 : vector<8x1xi1> to vector<8x1xi1>
    %15 = vector.broadcast %14 : vector<8x1xi1> to vector<8x128xi1>
    %16 = arith.select %15, %6, %9 : vector<8x128xi1>, vector<8x128xf32>
    %c0_i32 = arith.constant 0 : i32
    %17 = vector.broadcast %c0_i32 : i32 to vector<8x1xi32>
    %18 = arith.cmpi eq, %11, %17 : vector<8x1xi32>
    %19 = vector.shape_cast %18 : vector<8x1xi1> to vector<8x1xi1>
    %20 = vector.broadcast %19 : vector<8x1xi1> to vector<8x128xi1>
    %21 = arith.select %20, %3, %16 : vector<8x128xi1>, vector<8x128xf32>
    %c1_8 = arith.constant 1 : index
    %c0_9 = arith.constant 0 : index
    %c0_10 = arith.constant 0 : index
    %22 = vector.load %arg0[%c1_8, %c0_9, %c0_10] : memref<8x8x1xi32, #tpu.memory_space<vmem>>, vector<1x8x1xi32>
    %23 = vector.shape_cast %22 : vector<1x8x1xi32> to vector<8x1xi32>
    %c1_i32_11 = arith.constant 1 : i32
    %24 = vector.broadcast %c1_i32_11 : i32 to vector<8x1xi32>
    %25 = arith.cmpi eq, %23, %24 : vector<8x1xi32>
    %26 = vector.shape_cast %25 : vector<8x1xi1> to vector<8x1xi1>
    %27 = vector.broadcast %26 : vector<8x1xi1> to vector<8x128xi1>
    %28 = arith.select %27, %6, %9 : vector<8x128xi1>, vector<8x128xf32>
    %c0_i32_12 = arith.constant 0 : i32
    %29 = vector.broadcast %c0_i32_12 : i32 to vector<8x1xi32>
    %30 = arith.cmpi eq, %23, %29 : vector<8x1xi32>
    %31 = vector.shape_cast %30 : vector<8x1xi1> to vector<8x1xi1>
    %32 = vector.broadcast %31 : vector<8x1xi1> to vector<8x128xi1>
    %33 = arith.select %32, %3, %28 : vector<8x128xi1>, vector<8x128xf32>
    %c2_13 = arith.constant 2 : index
    %c0_14 = arith.constant 0 : index
    %c0_15 = arith.constant 0 : index
    %34 = vector.load %arg0[%c2_13, %c0_14, %c0_15] : memref<8x8x1xi32, #tpu.memory_space<vmem>>, vector<1x8x1xi32>
    %35 = vector.shape_cast %34 : vector<1x8x1xi32> to vector<8x1xi32>
    %c1_i32_16 = arith.constant 1 : i32
    %36 = vector.broadcast %c1_i32_16 : i32 to vector<8x1xi32>
    %37 = arith.cmpi eq, %35, %36 : vector<8x1xi32>
    %38 = vector.shape_cast %37 : vector<8x1xi1> to vector<8x1xi1>
    %39 = vector.broadcast %38 : vector<8x1xi1> to vector<8x128xi1>
    %40 = arith.select %39, %6, %9 : vector<8x128xi1>, vector<8x128xf32>
    %c0_i32_17 = arith.constant 0 : i32
    %41 = vector.broadcast %c0_i32_17 : i32 to vector<8x1xi32>
    %42 = arith.cmpi eq, %35, %41 : vector<8x1xi32>
    %43 = vector.shape_cast %42 : vector<8x1xi1> to vector<8x1xi1>
    %44 = vector.broadcast %43 : vector<8x1xi1> to vector<8x128xi1>
    %45 = arith.select %44, %3, %40 : vector<8x128xi1>, vector<8x128xf32>
    %c3 = arith.constant 3 : index
    %c0_18 = arith.constant 0 : index
    %c0_19 = arith.constant 0 : index
    %46 = vector.load %arg0[%c3, %c0_18, %c0_19] : memref<8x8x1xi32, #tpu.memory_space<vmem>>, vector<1x8x1xi32>
    %47 = vector.shape_cast %46 : vector<1x8x1xi32> to vector<8x1xi32>
    %c1_i32_20 = arith.constant 1 : i32
    %48 = vector.broadcast %c1_i32_20 : i32 to vector<8x1xi32>
    %49 = arith.cmpi eq, %47, %48 : vector<8x1xi32>
    %50 = vector.shape_cast %49 : vector<8x1xi1> to vector<8x1xi1>
    %51 = vector.broadcast %50 : vector<8x1xi1> to vector<8x128xi1>
    %52 = arith.select %51, %6, %9 : vector<8x128xi1>, vector<8x128xf32>
    %c0_i32_21 = arith.constant 0 : i32
    %53 = vector.broadcast %c0_i32_21 : i32 to vector<8x1xi32>
    %54 = arith.cmpi eq, %47, %53 : vector<8x1xi32>
    %55 = vector.shape_cast %54 : vector<8x1xi1> to vector<8x1xi1>
    %56 = vector.broadcast %55 : vector<8x1xi1> to vector<8x128xi1>
    %57 = arith.select %56, %3, %52 : vector<8x128xi1>, vector<8x128xf32>
    %c4 = arith.constant 4 : index
    %c0_22 = arith.constant 0 : index
    %c0_23 = arith.constant 0 : index
    %58 = vector.load %arg0[%c4, %c0_22, %c0_23] : memref<8x8x1xi32, #tpu.memory_space<vmem>>, vector<1x8x1xi32>
    %59 = vector.shape_cast %58 : vector<1x8x1xi32> to vector<8x1xi32>
    %c1_i32_24 = arith.constant 1 : i32
    %60 = vector.broadcast %c1_i32_24 : i32 to vector<8x1xi32>
    %61 = arith.cmpi eq, %59, %60 : vector<8x1xi32>
    %62 = vector.shape_cast %61 : vector<8x1xi1> to vector<8x1xi1>
    %63 = vector.broadcast %62 : vector<8x1xi1> to vector<8x128xi1>
    %64 = arith.select %63, %6, %9 : vector<8x128xi1>, vector<8x128xf32>
    %c0_i32_25 = arith.constant 0 : i32
    %65 = vector.broadcast %c0_i32_25 : i32 to vector<8x1xi32>
    %66 = arith.cmpi eq, %59, %65 : vector<8x1xi32>
    %67 = vector.shape_cast %66 : vector<8x1xi1> to vector<8x1xi1>
    %68 = vector.broadcast %67 : vector<8x1xi1> to vector<8x128xi1>
    %69 = arith.select %68, %3, %64 : vector<8x128xi1>, vector<8x128xf32>
    %c5 = arith.constant 5 : index
    %c0_26 = arith.constant 0 : index
    %c0_27 = arith.constant 0 : index
    %70 = vector.load %arg0[%c5, %c0_26, %c0_27] : memref<8x8x1xi32, #tpu.memory_space<vmem>>, vector<1x8x1xi32>
    %71 = vector.shape_cast %70 : vector<1x8x1xi32> to vector<8x1xi32>
    %c1_i32_28 = arith.constant 1 : i32
    %72 = vector.broadcast %c1_i32_28 : i32 to vector<8x1xi32>
    %73 = arith.cmpi eq, %71, %72 : vector<8x1xi32>
    %74 = vector.shape_cast %73 : vector<8x1xi1> to vector<8x1xi1>
    %75 = vector.broadcast %74 : vector<8x1xi1> to vector<8x128xi1>
    %76 = arith.select %75, %6, %9 : vector<8x128xi1>, vector<8x128xf32>
    %c0_i32_29 = arith.constant 0 : i32
    %77 = vector.broadcast %c0_i32_29 : i32 to vector<8x1xi32>
    %78 = arith.cmpi eq, %71, %77 : vector<8x1xi32>
    %79 = vector.shape_cast %78 : vector<8x1xi1> to vector<8x1xi1>
    %80 = vector.broadcast %79 : vector<8x1xi1> to vector<8x128xi1>
    %81 = arith.select %80, %3, %76 : vector<8x128xi1>, vector<8x128xf32>
    %c6 = arith.constant 6 : index
    %c0_30 = arith.constant 0 : index
    %c0_31 = arith.constant 0 : index
    %82 = vector.load %arg0[%c6, %c0_30, %c0_31] : memref<8x8x1xi32, #tpu.memory_space<vmem>>, vector<1x8x1xi32>
    %83 = vector.shape_cast %82 : vector<1x8x1xi32> to vector<8x1xi32>
    %c1_i32_32 = arith.constant 1 : i32
    %84 = vector.broadcast %c1_i32_32 : i32 to vector<8x1xi32>
    %85 = arith.cmpi eq, %83, %84 : vector<8x1xi32>
    %86 = vector.shape_cast %85 : vector<8x1xi1> to vector<8x1xi1>
    %87 = vector.broadcast %86 : vector<8x1xi1> to vector<8x128xi1>
    %88 = arith.select %87, %6, %9 : vector<8x128xi1>, vector<8x128xf32>
    %c0_i32_33 = arith.constant 0 : i32
    %89 = vector.broadcast %c0_i32_33 : i32 to vector<8x1xi32>
    %90 = arith.cmpi eq, %83, %89 : vector<8x1xi32>
    %91 = vector.shape_cast %90 : vector<8x1xi1> to vector<8x1xi1>
    %92 = vector.broadcast %91 : vector<8x1xi1> to vector<8x128xi1>
    %93 = arith.select %92, %3, %88 : vector<8x128xi1>, vector<8x128xf32>
    %c7 = arith.constant 7 : index
    %c0_34 = arith.constant 0 : index
    %c0_35 = arith.constant 0 : index
    %94 = vector.load %arg0[%c7, %c0_34, %c0_35] : memref<8x8x1xi32, #tpu.memory_space<vmem>>, vector<1x8x1xi32>
    %95 = vector.shape_cast %94 : vector<1x8x1xi32> to vector<8x1xi32>
    %c1_i32_36 = arith.constant 1 : i32
    %96 = vector.broadcast %c1_i32_36 : i32 to vector<8x1xi32>
    %97 = arith.cmpi eq, %95, %96 : vector<8x1xi32>
    %98 = vector.shape_cast %97 : vector<8x1xi1> to vector<8x1xi1>
    %99 = vector.broadcast %98 : vector<8x1xi1> to vector<8x128xi1>
    %100 = arith.select %99, %6, %9 : vector<8x128xi1>, vector<8x128xf32>
    %c0_i32_37 = arith.constant 0 : i32
    %101 = vector.broadcast %c0_i32_37 : i32 to vector<8x1xi32>
    %102 = arith.cmpi eq, %95, %101 : vector<8x1xi32>
    %103 = vector.shape_cast %102 : vector<8x1xi1> to vector<8x1xi1>
    %104 = vector.broadcast %103 : vector<8x1xi1> to vector<8x128xi1>
    %105 = arith.select %104, %3, %100 : vector<8x128xi1>, vector<8x128xf32>
    %cst = arith.constant 0.000000e+00 : f32
    %106 = vector.broadcast %cst : f32 to vector<8x32xf32>
    %cst_38 = arith.constant dense<0.000000e+00> : vector<8x128xf32>
    %107 = tpu.matmul %106, %0, %cst_38 {dimension_numbers = #tpu.dot_dimension_numbers<[1], [0], [0], [1], [0, 0, 1, 1], [], []>} : vector<8x32xf32>, vector<32x128xf32>, vector<8x128xf32> -> vector<8x128xf32>
    %108 = arith.addf %21, %107 : vector<8x128xf32>
    %109 = arith.negf %108 : vector<8x128xf32>
    %110 = math.exp %109 : vector<8x128xf32>
    %cst_39 = arith.constant 1.000000e+00 : f32
    %111 = vector.broadcast %cst_39 : f32 to vector<8x128xf32>
    %112 = arith.addf %111, %110 : vector<8x128xf32>
    %113 = arith.divf %111, %112 : vector<8x128xf32>
    %114 = vector.extract_strided_slice %113 {offsets = [0, 0], sizes = [8, 32], strides = [1, 1]} : vector<8x128xf32> to vector<8x32xf32>
    %115 = vector.extract_strided_slice %113 {offsets = [0, 32], sizes = [8, 32], strides = [1, 1]} : vector<8x128xf32> to vector<8x32xf32>
    %116 = vector.extract_strided_slice %113 {offsets = [0, 96], sizes = [8, 32], strides = [1, 1]} : vector<8x128xf32> to vector<8x32xf32>
    %117 = arith.mulf %116, %114 : vector<8x32xf32>
    %118 = arith.mulf %106, %115 : vector<8x32xf32>
    %119 = arith.addf %117, %118 : vector<8x32xf32>
    %cst_40 = arith.constant dense<0.000000e+00> : vector<8x128xf32>
    %120 = tpu.matmul %119, %0, %cst_40 {dimension_numbers = #tpu.dot_dimension_numbers<[1], [0], [0], [1], [0, 0, 1, 1], [], []>} : vector<8x32xf32>, vector<32x128xf32>, vector<8x128xf32> -> vector<8x128xf32>
    %121 = arith.addf %33, %120 : vector<8x128xf32>
    %122 = arith.negf %121 : vector<8x128xf32>
    %123 = math.exp %122 : vector<8x128xf32>
    %cst_41 = arith.constant 1.000000e+00 : f32
    %124 = vector.broadcast %cst_41 : f32 to vector<8x128xf32>
    %125 = arith.addf %124, %123 : vector<8x128xf32>
    %126 = arith.divf %124, %125 : vector<8x128xf32>
    %127 = vector.extract_strided_slice %126 {offsets = [0, 0], sizes = [8, 32], strides = [1, 1]} : vector<8x128xf32> to vector<8x32xf32>
    %128 = vector.extract_strided_slice %126 {offsets = [0, 32], sizes = [8, 32], strides = [1, 1]} : vector<8x128xf32> to vector<8x32xf32>
    %129 = vector.extract_strided_slice %126 {offsets = [0, 96], sizes = [8, 32], strides = [1, 1]} : vector<8x128xf32> to vector<8x32xf32>
    %130 = arith.mulf %129, %127 : vector<8x32xf32>
    %131 = arith.mulf %119, %128 : vector<8x32xf32>
    %132 = arith.addf %130, %131 : vector<8x32xf32>
    %cst_42 = arith.constant dense<0.000000e+00> : vector<8x128xf32>
    %133 = tpu.matmul %132, %0, %cst_42 {dimension_numbers = #tpu.dot_dimension_numbers<[1], [0], [0], [1], [0, 0, 1, 1], [], []>} : vector<8x32xf32>, vector<32x128xf32>, vector<8x128xf32> -> vector<8x128xf32>
    %134 = arith.addf %45, %133 : vector<8x128xf32>
    %135 = arith.negf %134 : vector<8x128xf32>
    %136 = math.exp %135 : vector<8x128xf32>
    %cst_43 = arith.constant 1.000000e+00 : f32
    %137 = vector.broadcast %cst_43 : f32 to vector<8x128xf32>
    %138 = arith.addf %137, %136 : vector<8x128xf32>
    %139 = arith.divf %137, %138 : vector<8x128xf32>
    %140 = vector.extract_strided_slice %139 {offsets = [0, 0], sizes = [8, 32], strides = [1, 1]} : vector<8x128xf32> to vector<8x32xf32>
    %141 = vector.extract_strided_slice %139 {offsets = [0, 32], sizes = [8, 32], strides = [1, 1]} : vector<8x128xf32> to vector<8x32xf32>
    %142 = vector.extract_strided_slice %139 {offsets = [0, 96], sizes = [8, 32], strides = [1, 1]} : vector<8x128xf32> to vector<8x32xf32>
    %143 = arith.mulf %142, %140 : vector<8x32xf32>
    %144 = arith.mulf %132, %141 : vector<8x32xf32>
    %145 = arith.addf %143, %144 : vector<8x32xf32>
    %cst_44 = arith.constant dense<0.000000e+00> : vector<8x128xf32>
    %146 = tpu.matmul %145, %0, %cst_44 {dimension_numbers = #tpu.dot_dimension_numbers<[1], [0], [0], [1], [0, 0, 1, 1], [], []>} : vector<8x32xf32>, vector<32x128xf32>, vector<8x128xf32> -> vector<8x128xf32>
    %147 = arith.addf %57, %146 : vector<8x128xf32>
    %148 = arith.negf %147 : vector<8x128xf32>
    %149 = math.exp %148 : vector<8x128xf32>
    %cst_45 = arith.constant 1.000000e+00 : f32
    %150 = vector.broadcast %cst_45 : f32 to vector<8x128xf32>
    %151 = arith.addf %150, %149 : vector<8x128xf32>
    %152 = arith.divf %150, %151 : vector<8x128xf32>
    %153 = vector.extract_strided_slice %152 {offsets = [0, 0], sizes = [8, 32], strides = [1, 1]} : vector<8x128xf32> to vector<8x32xf32>
    %154 = vector.extract_strided_slice %152 {offsets = [0, 32], sizes = [8, 32], strides = [1, 1]} : vector<8x128xf32> to vector<8x32xf32>
    %155 = vector.extract_strided_slice %152 {offsets = [0, 96], sizes = [8, 32], strides = [1, 1]} : vector<8x128xf32> to vector<8x32xf32>
    %156 = arith.mulf %155, %153 : vector<8x32xf32>
    %157 = arith.mulf %145, %154 : vector<8x32xf32>
    %158 = arith.addf %156, %157 : vector<8x32xf32>
    %cst_46 = arith.constant dense<0.000000e+00> : vector<8x128xf32>
    %159 = tpu.matmul %158, %0, %cst_46 {dimension_numbers = #tpu.dot_dimension_numbers<[1], [0], [0], [1], [0, 0, 1, 1], [], []>} : vector<8x32xf32>, vector<32x128xf32>, vector<8x128xf32> -> vector<8x128xf32>
    %160 = arith.addf %69, %159 : vector<8x128xf32>
    %161 = arith.negf %160 : vector<8x128xf32>
    %162 = math.exp %161 : vector<8x128xf32>
    %cst_47 = arith.constant 1.000000e+00 : f32
    %163 = vector.broadcast %cst_47 : f32 to vector<8x128xf32>
    %164 = arith.addf %163, %162 : vector<8x128xf32>
    %165 = arith.divf %163, %164 : vector<8x128xf32>
    %166 = vector.extract_strided_slice %165 {offsets = [0, 0], sizes = [8, 32], strides = [1, 1]} : vector<8x128xf32> to vector<8x32xf32>
    %167 = vector.extract_strided_slice %165 {offsets = [0, 32], sizes = [8, 32], strides = [1, 1]} : vector<8x128xf32> to vector<8x32xf32>
    %168 = vector.extract_strided_slice %165 {offsets = [0, 96], sizes = [8, 32], strides = [1, 1]} : vector<8x128xf32> to vector<8x32xf32>
    %169 = arith.mulf %168, %166 : vector<8x32xf32>
    %170 = arith.mulf %158, %167 : vector<8x32xf32>
    %171 = arith.addf %169, %170 : vector<8x32xf32>
    %cst_48 = arith.constant dense<0.000000e+00> : vector<8x128xf32>
    %172 = tpu.matmul %171, %0, %cst_48 {dimension_numbers = #tpu.dot_dimension_numbers<[1], [0], [0], [1], [0, 0, 1, 1], [], []>} : vector<8x32xf32>, vector<32x128xf32>, vector<8x128xf32> -> vector<8x128xf32>
    %173 = arith.addf %81, %172 : vector<8x128xf32>
    %174 = arith.negf %173 : vector<8x128xf32>
    %175 = math.exp %174 : vector<8x128xf32>
    %cst_49 = arith.constant 1.000000e+00 : f32
    %176 = vector.broadcast %cst_49 : f32 to vector<8x128xf32>
    %177 = arith.addf %176, %175 : vector<8x128xf32>
    %178 = arith.divf %176, %177 : vector<8x128xf32>
    %179 = vector.extract_strided_slice %178 {offsets = [0, 0], sizes = [8, 32], strides = [1, 1]} : vector<8x128xf32> to vector<8x32xf32>
    %180 = vector.extract_strided_slice %178 {offsets = [0, 32], sizes = [8, 32], strides = [1, 1]} : vector<8x128xf32> to vector<8x32xf32>
    %181 = vector.extract_strided_slice %178 {offsets = [0, 96], sizes = [8, 32], strides = [1, 1]} : vector<8x128xf32> to vector<8x32xf32>
    %182 = arith.mulf %181, %179 : vector<8x32xf32>
    %183 = arith.mulf %171, %180 : vector<8x32xf32>
    %184 = arith.addf %182, %183 : vector<8x32xf32>
    %cst_50 = arith.constant dense<0.000000e+00> : vector<8x128xf32>
    %185 = tpu.matmul %184, %0, %cst_50 {dimension_numbers = #tpu.dot_dimension_numbers<[1], [0], [0], [1], [0, 0, 1, 1], [], []>} : vector<8x32xf32>, vector<32x128xf32>, vector<8x128xf32> -> vector<8x128xf32>
    %186 = arith.addf %93, %185 : vector<8x128xf32>
    %187 = arith.negf %186 : vector<8x128xf32>
    %188 = math.exp %187 : vector<8x128xf32>
    %cst_51 = arith.constant 1.000000e+00 : f32
    %189 = vector.broadcast %cst_51 : f32 to vector<8x128xf32>
    %190 = arith.addf %189, %188 : vector<8x128xf32>
    %191 = arith.divf %189, %190 : vector<8x128xf32>
    %192 = vector.extract_strided_slice %191 {offsets = [0, 0], sizes = [8, 32], strides = [1, 1]} : vector<8x128xf32> to vector<8x32xf32>
    %193 = vector.extract_strided_slice %191 {offsets = [0, 32], sizes = [8, 32], strides = [1, 1]} : vector<8x128xf32> to vector<8x32xf32>
    %194 = vector.extract_strided_slice %191 {offsets = [0, 96], sizes = [8, 32], strides = [1, 1]} : vector<8x128xf32> to vector<8x32xf32>
    %195 = arith.mulf %194, %192 : vector<8x32xf32>
    %196 = arith.mulf %184, %193 : vector<8x32xf32>
    %197 = arith.addf %195, %196 : vector<8x32xf32>
    %cst_52 = arith.constant dense<0.000000e+00> : vector<8x128xf32>
    %198 = tpu.matmul %197, %0, %cst_52 {dimension_numbers = #tpu.dot_dimension_numbers<[1], [0], [0], [1], [0, 0, 1, 1], [], []>} : vector<8x32xf32>, vector<32x128xf32>, vector<8x128xf32> -> vector<8x128xf32>
    %199 = arith.addf %105, %198 : vector<8x128xf32>
    %200 = arith.negf %199 : vector<8x128xf32>
    %201 = math.exp %200 : vector<8x128xf32>
    %cst_53 = arith.constant 1.000000e+00 : f32
    %202 = vector.broadcast %cst_53 : f32 to vector<8x128xf32>
    %203 = arith.addf %202, %201 : vector<8x128xf32>
    %204 = arith.divf %202, %203 : vector<8x128xf32>
    %205 = vector.extract_strided_slice %204 {offsets = [0, 0], sizes = [8, 32], strides = [1, 1]} : vector<8x128xf32> to vector<8x32xf32>
    %206 = vector.extract_strided_slice %204 {offsets = [0, 32], sizes = [8, 32], strides = [1, 1]} : vector<8x128xf32> to vector<8x32xf32>
    %207 = vector.extract_strided_slice %204 {offsets = [0, 64], sizes = [8, 32], strides = [1, 1]} : vector<8x128xf32> to vector<8x32xf32>
    %208 = vector.extract_strided_slice %204 {offsets = [0, 96], sizes = [8, 32], strides = [1, 1]} : vector<8x128xf32> to vector<8x32xf32>
    %209 = arith.mulf %208, %205 : vector<8x32xf32>
    %210 = arith.mulf %197, %206 : vector<8x32xf32>
    %211 = arith.addf %209, %210 : vector<8x32xf32>
    %212 = math.tanh %211 : vector<8x32xf32>
    %213 = arith.mulf %212, %207 : vector<8x32xf32>
    %c0_54 = arith.constant 0 : index
    %c0_55 = arith.constant 0 : index
    %214 = vector.load %arg3[%c0_54, %c0_55] : memref<32x128xf32, #tpu.memory_space<vmem>>, vector<32x128xf32>
    %cst_56 = arith.constant dense<0.000000e+00> : vector<8x128xf32>
    %215 = tpu.matmul %213, %214, %cst_56 {dimension_numbers = #tpu.dot_dimension_numbers<[1], [0], [0], [1], [0, 0, 1, 1], [], []>} : vector<8x32xf32>, vector<32x128xf32>, vector<8x128xf32> -> vector<8x128xf32>
    %c0_57 = arith.constant 0 : index
    %c0_58 = arith.constant 0 : index
    %216 = vector.load %arg4[%c0_57, %c0_58] : memref<1x128xf32, #tpu.memory_space<vmem>>, vector<1x128xf32>
    %217 = vector.broadcast %216 : vector<1x128xf32> to vector<8x128xf32>
    %218 = arith.addf %215, %217 : vector<8x128xf32>
    %219 = math.tanh %218 : vector<8x128xf32>
    %220 = tpu.iota {dimensions = array<i32: 1>} : vector<8x128xi32>
    %c10_i32 = arith.constant 10 : i32
    %221 = vector.broadcast %c10_i32 : i32 to vector<8x128xi32>
    %222 = arith.cmpi slt, %220, %221 : vector<8x128xi32>
    %cst_59 = arith.constant -1.000000e+30 : f32
    %223 = vector.broadcast %cst_59 : f32 to vector<8x128xf32>
    %224 = arith.select %222, %219, %223 : vector<8x128xi1>, vector<8x128xf32>
    %cst_60 = arith.constant dense<0xFF800000> : vector<8xf32>
    %225 = vector.multi_reduction <maximumf>, %224, %cst_60 [1] : vector<8x128xf32> to vector<8xf32>
    %226 = vector.shape_cast %225 : vector<8xf32> to vector<8x1xf32>
    %227 = vector.broadcast %226 : vector<8x1xf32> to vector<8x128xf32>
    %228 = arith.subf %224, %227 : vector<8x128xf32>
    %229 = math.exp %228 : vector<8x128xf32>
    %cst_61 = arith.constant dense<0.000000e+00> : vector<8xf32>
    %230 = vector.multi_reduction <add>, %229, %cst_61 [1] : vector<8x128xf32> to vector<8xf32>
    %231 = vector.shape_cast %230 : vector<8xf32> to vector<8x1xf32>
    %232 = math.log %231 : vector<8x1xf32>
    %233 = arith.addf %226, %232 : vector<8x1xf32>
    %234 = vector.broadcast %233 : vector<8x1xf32> to vector<8x128xf32>
    %235 = arith.subf %224, %234 : vector<8x128xf32>
    %c0_62 = arith.constant 0 : index
    %c0_63 = arith.constant 0 : index
    %236 = vector.load %arg5[%c0_62, %c0_63] : memref<8x128xf32, #tpu.memory_space<vmem>>, vector<8x128xf32>
    tpu.vector_store %arg5[%c0_62, %c0_63], %235 {strides = array<i32>} : memref<8x128xf32, #tpu.memory_space<vmem>>, vector<8x128xf32>,
    return
  }
}

</mosaic_0001>

<bundles_post_ra>
// kernel: peep_lstm_forward.1
= control target key start
LH: loop header
LB: loop body
LE: loop exit
PB: predicated region body
PF: predicated region fallthrough
CT: control target
= control target key end

     0   :  { %v1288_v0 = vmov 0.0|0.0   ;;  %vm1289_vm0 = vmmov 0   ;;  %v1290_v4 = vmov 0.0   ;;  %v1291_v7 = vmov 0   ;;  %s1292_s10 = smov 96   ;;  %s1294_s11 = smov 32   ;;  %s1526_s2 = inlined_call_operand.vmem [shape: f32[32,128], index: 2, kind: input, shape index: {}]   ;;  %s1527_s0 = inlined_call_operand.vmem [shape: s32[8,8,1], index: 0, kind: input, shape index: {}]   ;;  %s1528_s1 = inlined_call_operand.vmem [shape: f32[8,128], index: 1, kind: input, shape index: {}]   ;;  %s1529_s3 = inlined_call_operand.vmem [shape: f32[32,128], index: 3, kind: input, shape index: {}]   ;;  %s1530_s4 = inlined_call_operand.vmem [shape: f32[1,128], index: 4, kind: input, shape index: {}]   ;;  %s1531_s5 = inlined_call_operand.vmem [shape: f32[8,128], index: 5, kind: output, shape index: {}]  }
   0x1   :  { %1185 = vmatprep.subr.bf16.mxu0 %v1288_v0  ;;  %v20_v1 = vld [vmem:[%s1526_s2] sm:$0xff]  ;;  %v21_v2 = vld [vmem:[%s1526_s2 + $0x8] sm:$0xff]  ;;  %v22_v3 = vld [vmem:[%s1526_s2 + $0x10] sm:$0xff]  ;;  %1094 = vmatprep.mubr.msk.f32.mxu0 %vm1289_vm0, %v1290_v4  ;;  %vm166_vm7 = vcmask 261120  }
   0x2   :  { %v1337_v5 = vpack.c.bf16 %v21_v2, %v20_v1  ;;  %v23_v6 = vld [vmem:[%s1526_s2 + $0x18] sm:$0xff]  ;;  %1246 = vset.pattern.permute.xlu0 %v1291_v7  ;;  %v39_v8 = vld [vmem:[%s1527_s0] sm:$0xff]  ;;  %1247 = vset.pattern.permute.xlu1 %v1291_v7  ;;  %v1017_v26 = vld [vmem:[%s1527_s0 + $0x8] sm:$0xff] }
   0x3   :  { %vm40_vm1 = vcmp.eq.s32.totalorder %v39_v8, 1  ;;  %vm47_vm2 = vcmp.eq.s32.totalorder %v39_v8, 0  ;;  %1191 = vmatprep.subr.bf16.mxu1 %v1288_v0  ;;  %1105 = vmatprep.mubr.msk.f32.mxu1 %vm1289_vm0, %v1290_v4  ;;  %v1351_v9 = vpack.c.bf16 %v23_v6, %v22_v3  ;;  %v1372_v13 = vld [vmem:[%s1528_s1 + $0x1] ss:$0 sm:$0xff]  ;;  %v1377_v14 = vld [vmem:[%s1528_s1 + $0x2] ss:$0 sm:$0xff] }
   0x4   :  { %1187 = vmatpush3.bf16.msra.mxu0 %v1337_v5  ;;  %v41_v10 = vsel %vm40_vm1, 1, %v1291_v7  ;;  %1193 = vmatpush3.bf16.msra.mxu1 %v1337_v5  ;;  %v48_v11 = vsel %vm47_vm2, 1, %v1291_v7  ;;  %v1384_v17 = vld [vmem:[%s1528_s1] ss:$0 sm:$0xff]  ;;  %vm56_vm5 = vcmp.eq.s32.totalorder %v1017_v26, 1  ;;  %s1293_s1 = smov 64  }
   0x5   :  { %1188 = vmatprep.subr.bf16.mxu0 %v1288_v0  ;;  %43 = vperm.xlu0 %1246, %v41_v10   ;;  %v57_v28 = vsel %vm56_vm5, 1, %v1291_v7  ;;  %vm63_vm6 = vcmp.eq.s32.totalorder %v1017_v26, 0  ;;  %v1018_v45 = vld [vmem:[%s1527_s0 + $0x10] sm:$0xff]  ;;  %v1019_v2 = vld [vmem:[%s1527_s0 + $0x18] sm:$0xff] }
   0x6   :  { %1194 = vmatprep.subr.bf16.mxu1 %v1288_v0  ;;  %v64_v33 = vsel %vm63_vm6, 1, %v1291_v7  ;;  %vm72_vm10 = vcmp.eq.s32.totalorder %v1018_v45, 1  ;;  %vm79_vm11 = vcmp.eq.s32.totalorder %v1018_v45, 0  ;;  %vm88_vm14 = vcmp.eq.s32.totalorder %v1019_v2, 1 }
   0x7   :  { %v73_v47 = vsel %vm72_vm10, 1, %v1291_v7  ;;  %v80_v53 = vsel %vm79_vm11, 1, %v1291_v7  ;;  %v89_v6 = vsel %vm88_vm14, 1, %v1291_v7  ;;  %vm95_vm15 = vcmp.eq.s32.totalorder %v1019_v2, 0 }
   0x8   :  { %1190 = vmatpush3.bf16.msra.mxu0 %v1351_v9  ;;  %1196 = vmatpush3.bf16.msra.mxu1 %v1351_v9 }
   0x9   :  { %50 = vperm.xlu0 %1246, %v48_v11   ;;  %1197 = vmatprep.subr.bf16.mxu0 %v1288_v0 }
   0xa   :  { %1203 = vmatprep.subr.bf16.mxu1 %v1288_v0 }
   0xb   :  { %1095 = vmatmul.mubr.f32.vlgmr.msra.gmra.mrb[0].mxu0 %v1290_v4 }
   0xc   :  { %1199 = vmatpush3.bf16.msra.mxu0 %v1337_v5  ;;  %1116 = vmatprep.mubr.msk.f32.mxu0 %vm1289_vm0, %v1290_v4 }
   0xd   :  { %1200 = vmatprep.subr.bf16.mxu0 %v1288_v0 }
  0x10   :  { %1202 = vmatpush3.bf16.msra.mxu0 %v1351_v9 }
  0x11   :  { %1209 = vmatprep.subr.bf16.mxu0 %v1288_v0 }
  0x84   :  { %v44_v12 = vpop.permute.xlu0 %43 }
  0x85   :  { %vm45_vm3 = vcmp.eq.s32.totalorder %v44_v12, 1 }
  0x86   :  { %v46_v16 = vsel %vm45_vm3, %v1372_v13, %v1377_v14 }
  0x88   :  { %v51_v15 = vpop.permute.xlu0 %50 }
  0x89   :  { %vm52_vm4 = vcmp.eq.s32.totalorder %v51_v15, 1 }
  0x8a   :  { %v53_v18 = vsel %vm52_vm4, %v1384_v17, %v46_v16  ;;  %v96_v16 = vsel %vm95_vm15, 1, %v1291_v7 }
  0xde   :  { %v236_v19 = vpop.f32.mrb[0].mxu0 }
  0xdf   :  { %v240_v20 = vadd.f32 %v236_v19, %v53_v18  ;;  %v1096_v21 = vpop.f32.mrb[1].mxu0 }
  0xe1   :  { %v1024_v22 = vmul.f32 -1.442695, %v240_v20 }
  0xe3   :  { %1248 = vpow2.f32 %v1024_v22 }
  0xed   :  { %v1249_v23 = vpop.eup %1248 }
  0xee   :  { %v244_v24 = vadd.f32 1.0, %v1249_v23 }
  0xf0   :  { %1250 = vrcp.f32 %v244_v24 }
  0xfa   :  { %v1251_v25 = vpop.eup %1250 }
  0xfb   :  { %248 = vrot.lane.b32.xlu1 %v1251_v25, %s1292_s10  ;;  %v252_v27 = vmul.f32 0.0, %v1251_v25 }
  0xff   :  { %254 = vrot.lane.b32.xlu1 %v252_v27, %s1293_s1 }
 0x103   :  { %59 = vperm.xlu1 %1247, %v57_v28  }
 0x16d   :  { %v249_v29 = vpop.permute.xlu1 %248 }
 0x16e   :  { %v251_v30 = vmul.f32 %v1251_v25, %v249_v29  ;;  %v1020_v29 = vld [vmem:[%s1527_s0 + $0x20] sm:$0xff] }
 0x16f   :  { %vm104_vm3 = vcmp.eq.s32.totalorder %v1020_v29, 1  ;;  %vm111_vm4 = vcmp.eq.s32.totalorder %v1020_v29, 0 }
 0x171   :  { %v255_v31 = vpop.permute.xlu1 %254 }
 0x172   :  { %v257_v32 = vadd.f32 %v255_v31, %v251_v30  ;;  %v105_v31 = vsel %vm104_vm3, 1, %v1291_v7 }
 0x174   :  { %259 = vrot.lane.b32.xlu0 %v257_v32, %s1294_s11 }
 0x178   :  { %66 = vperm.xlu0 %1246, %v64_v33  }
 0x182   :  { %v60_v35 = vpop.permute.xlu1 %59 }
 0x183   :  { %vm61_vm8 = vcmp.eq.s32.totalorder %v60_v35, 1 }
 0x184   :  { %v62_v37 = vsel %vm61_vm8, %v1372_v13, %v1377_v14 }
 0x1e6   :  { %v260_v34 = vpop.permute.xlu0 %259 }
 0x1e7   :  { %1106 = vmatmul.mubr.msk.f32.vlgmr.msra.gmra.mrb[0].mxu1 %vm166_vm7, %v260_v34 }
 0x1e8   :  { %1205 = vmatpush3.bf16.msra.mxu1 %v1337_v5  ;;  %1127 = vmatprep.mubr.msk.f32.mxu1 %vm1289_vm0, %v1290_v4 }
 0x1e9   :  { %1206 = vmatprep.subr.bf16.mxu1 %v1288_v0 }
 0x1ec   :  { %1208 = vmatpush3.bf16.msra.mxu1 %v1351_v9 }
 0x1ed   :  { %1215 = vmatprep.subr.bf16.mxu1 %v1288_v0 }
 0x1f7   :  { %v67_v36 = vpop.permute.xlu0 %66 }
 0x1f8   :  { %vm68_vm9 = vcmp.eq.s32.totalorder %v67_v36, 1 }
 0x1f9   :  { %v69_v38 = vsel %vm68_vm9, %v1384_v17, %v62_v37  ;;  %v112_v37 = vsel %vm111_vm4, 1, %v1291_v7 }
 0x2ba   :  { %v329_v39 = vpop.f32.mrb[0].mxu1 }
 0x2bb   :  { %v333_v40 = vadd.f32 %v329_v39, %v69_v38  ;;  %v1107_v41 = vpop.f32.mrb[1].mxu1 }
 0x2bd   :  { %v1026_v42 = vmul.f32 -1.442695, %v333_v40 }
 0x2bf   :  { %1252 = vpow2.f32 %v1026_v42 }
 0x2c9   :  { %v1253_v43 = vpop.eup %1252 }
 0x2ca   :  { %v337_v44 = vadd.f32 1.0, %v1253_v43 }
 0x2cc   :  { %1254 = vrcp.f32 %v337_v44 }
 0x2d6   :  { %v1255_v46 = vpop.eup %1254 }
 0x2d7   :  { %345 = vrot.lane.b32.xlu0 %v1255_v46, %s1293_s1  ;;  %341 = vrot.lane.b32.xlu1 %v1255_v46, %s1292_s10 }
 0x2db   :  { %75 = vperm.xlu0 %1246, %v73_v47  }
 0x349   :  { %v346_v48 = vpop.permute.xlu0 %345  ;;  %v342_v49 = vpop.permute.xlu1 %341 }
 0x34a   :  { %v348_v50 = vmul.f32 %v346_v48, %v257_v32  ;;  %v344_v51 = vmul.f32 %v1255_v46, %v342_v49  ;;  %v1021_v49 = vld [vmem:[%s1527_s0 + $0x28] sm:$0xff] }
 0x34b   :  { %vm120_vm8 = vcmp.eq.s32.totalorder %v1021_v49, 1  ;;  %vm127_vm9 = vcmp.eq.s32.totalorder %v1021_v49, 0 }
 0x34c   :  { %v349_v52 = vadd.f32 %v348_v50, %v344_v51  ;;  %v121_v51 = vsel %vm120_vm8, 1, %v1291_v7 }
 0x34e   :  { %351 = vrot.lane.b32.xlu1 %v349_v52, %s1294_s11 }
 0x352   :  { %82 = vperm.xlu1 %1247, %v80_v53  }
 0x35a   :  { %v76_v55 = vpop.permute.xlu0 %75 }
 0x35b   :  { %vm77_vm12 = vcmp.eq.s32.totalorder %v76_v55, 1 }
 0x35c   :  { %v78_v57 = vsel %vm77_vm12, %v1372_v13, %v1377_v14 }
 0x3c0   :  { %v352_v54 = vpop.permute.xlu1 %351 }
 0x3c1   :  { %1117 = vmatmul.mubr.msk.f32.vlgmr.msra.gmra.mrb[2].mxu0 %vm166_vm7, %v352_v54 }
 0x3c2   :  { %1211 = vmatpush3.bf16.msra.mxu0 %v1337_v5  ;;  %1138 = vmatprep.mubr.msk.f32.mxu0 %vm1289_vm0, %v1290_v4 }
 0x3c3   :  { %1212 = vmatprep.subr.bf16.mxu0 %v1288_v0 }
 0x3c6   :  { %1214 = vmatpush3.bf16.msra.mxu0 %v1351_v9 }
 0x3c7   :  { %1221 = vmatprep.subr.bf16.mxu0 %v1288_v0 }
 0x3d1   :  { %v83_v56 = vpop.permute.xlu1 %82 }
 0x3d2   :  { %vm84_vm13 = vcmp.eq.s32.totalorder %v83_v56, 1 }
 0x3d3   :  { %v85_v58 = vsel %vm84_vm13, %v1384_v17, %v78_v57  ;;  %v128_v57 = vsel %vm127_vm9, 1, %v1291_v7 }
 0x494   :  { %v421_v59 = vpop.f32.mrb[2].mxu0 }
 0x495   :  { %v425_v60 = vadd.f32 %v421_v59, %v85_v58  ;;  %v1118_v61 = vpop.f32.mrb[3].mxu0 }
 0x497   :  { %v1028_v62 = vmul.f32 -1.442695, %v425_v60 }
 0x499   :  { %1256 = vpow2.f32 %v1028_v62 }
 0x4a3   :  { %v1257_v63 = vpop.eup %1256 }
 0x4a4   :  { %v429_v1 = vadd.f32 1.0, %v1257_v63 }
 0x4a6   :  { %1258 = vrcp.f32 %v429_v1 }
 0x4b0   :  { %v1259_v3 = vpop.eup %1258 }
 0x4b1   :  { %437 = vrot.lane.b32.xlu1 %v1259_v3, %s1293_s1  ;;  %433 = vrot.lane.b32.xlu0 %v1259_v3, %s1292_s10 }
 0x4b5   :  { %91 = vperm.xlu1 %1247, %v89_v6  }
 0x523   :  { %v438_v8 = vpop.permute.xlu1 %437  ;;  %v434_v10 = vpop.permute.xlu0 %433 }
 0x524   :  { %v440_v11 = vmul.f32 %v438_v8, %v349_v52  ;;  %v436_v12 = vmul.f32 %v1259_v3, %v434_v10 }
 0x526   :  { %v441_v15 = vadd.f32 %v440_v11, %v436_v12 }
 0x528   :  { %443 = vrot.lane.b32.xlu0 %v441_v15, %s1294_s11 }
 0x52c   :  { %98 = vperm.xlu0 %1246, %v96_v16  }
 0x534   :  { %v92_v19 = vpop.permute.xlu1 %91 }
 0x535   :  { %vm93_vm1 = vcmp.eq.s32.totalorder %v92_v19, 1 }
 0x536   :  { %v94_v21 = vsel %vm93_vm1, %v1372_v13, %v1377_v14 }
 0x59a   :  { %v444_v18 = vpop.permute.xlu0 %443 }
 0x59b   :  { %1128 = vmatmul.mubr.msk.f32.vlgmr.msra.gmra.mrb[2].mxu1 %vm166_vm7, %v444_v18 }
 0x59c   :  { %1217 = vmatpush3.bf16.msra.mxu1 %v1337_v5  ;;  %1149 = vmatprep.mubr.msk.f32.mxu1 %vm1289_vm0, %v1290_v4 }
 0x59d   :  { %1218 = vmatprep.subr.bf16.mxu1 %v1288_v0 }
 0x5a0   :  { %1220 = vmatpush3.bf16.msra.mxu1 %v1351_v9 }
 0x5a1   :  { %1227 = vmatprep.subr.bf16.mxu1 %v1288_v0 }
 0x5ab   :  { %v99_v20 = vpop.permute.xlu0 %98 }
 0x5ac   :  { %vm100_vm2 = vcmp.eq.s32.totalorder %v99_v20, 1 }
 0x5ad   :  { %v101_v22 = vsel %vm100_vm2, %v1384_v17, %v94_v21 }
 0x66e   :  { %v513_v23 = vpop.f32.mrb[2].mxu1 }
 0x66f   :  { %v517_v24 = vadd.f32 %v513_v23, %v101_v22  ;;  %v1129_v25 = vpop.f32.mrb[3].mxu1 }
 0x671   :  { %v1030_v26 = vmul.f32 -1.442695, %v517_v24 }
 0x673   :  { %1260 = vpow2.f32 %v1030_v26 }
 0x67d   :  { %v1261_v27 = vpop.eup %1260 }
 0x67e   :  { %v521_v28 = vadd.f32 1.0, %v1261_v27 }
 0x680   :  { %1262 = vrcp.f32 %v521_v28 }
 0x68a   :  { %v1263_v30 = vpop.eup %1262 }
 0x68b   :  { %529 = vrot.lane.b32.xlu0 %v1263_v30, %s1293_s1  ;;  %525 = vrot.lane.b32.xlu1 %v1263_v30, %s1292_s10 }
 0x68f   :  { %107 = vperm.xlu0 %1246, %v105_v31  }
 0x6fd   :  { %v530_v32 = vpop.permute.xlu0 %529  ;;  %v526_v33 = vpop.permute.xlu1 %525 }
 0x6fe   :  { %v532_v34 = vmul.f32 %v530_v32, %v441_v15  ;;  %v528_v35 = vmul.f32 %v1263_v30, %v526_v33 }
 0x700   :  { %v533_v36 = vadd.f32 %v532_v34, %v528_v35 }
 0x702   :  { %535 = vrot.lane.b32.xlu1 %v533_v36, %s1294_s11 }
 0x706   :  { %114 = vperm.xlu1 %1247, %v112_v37  }
 0x70e   :  { %v108_v39 = vpop.permute.xlu0 %107 }
 0x70f   :  { %vm109_vm5 = vcmp.eq.s32.totalorder %v108_v39, 1 }
 0x710   :  { %v110_v41 = vsel %vm109_vm5, %v1372_v13, %v1377_v14 }
 0x774   :  { %v536_v38 = vpop.permute.xlu1 %535 }
 0x775   :  { %1139 = vmatmul.mubr.msk.f32.vlgmr.msra.gmra.mrb[4].mxu0 %vm166_vm7, %v536_v38 }
 0x776   :  { %1223 = vmatpush3.bf16.msra.mxu0 %v1337_v5  ;;  %1160 = vmatprep.mubr.msk.f32.mxu0 %vm1289_vm0, %v1290_v4 }
 0x777   :  { %1224 = vmatprep.subr.bf16.mxu0 %v1288_v0 }
 0x77a   :  { %1226 = vmatpush3.bf16.msra.mxu0 %v1351_v9 }
 0x77b   :  { %1233 = vmatprep.subr.bf16.mxu0 %v1288_v0 }
 0x785   :  { %v115_v40 = vpop.permute.xlu1 %114 }
 0x786   :  { %vm116_vm6 = vcmp.eq.s32.totalorder %v115_v40, 1 }
 0x787   :  { %v117_v42 = vsel %vm116_vm6, %v1384_v17, %v110_v41 }
 0x848   :  { %v605_v43 = vpop.f32.mrb[4].mxu0 }
 0x849   :  { %v609_v44 = vadd.f32 %v605_v43, %v117_v42  ;;  %v1140_v45 = vpop.f32.mrb[5].mxu0 }
 0x84b   :  { %v1032_v46 = vmul.f32 -1.442695, %v609_v44 }
 0x84d   :  { %1264 = vpow2.f32 %v1032_v46 }
 0x857   :  { %v1265_v47 = vpop.eup %1264 }
 0x858   :  { %v613_v48 = vadd.f32 1.0, %v1265_v47 }
 0x85a   :  { %1266 = vrcp.f32 %v613_v48 }
 0x864   :  { %v1267_v50 = vpop.eup %1266 }
 0x865   :  { %621 = vrot.lane.b32.xlu1 %v1267_v50, %s1293_s1  ;;  %617 = vrot.lane.b32.xlu0 %v1267_v50, %s1292_s10 }
 0x869   :  { %123 = vperm.xlu1 %1247, %v121_v51   ;;  %v910_v51 = vld [vmem:[%s1529_s3 + $0x18] sm:$0xff] }
 0x8d7   :  { %v622_v52 = vpop.permute.xlu1 %621  ;;  %v618_v53 = vpop.permute.xlu0 %617 }
 0x8d8   :  { %v624_v54 = vmul.f32 %v622_v52, %v533_v36  ;;  %v620_v55 = vmul.f32 %v1267_v50, %v618_v53 }
 0x8da   :  { %v625_v56 = vadd.f32 %v624_v54, %v620_v55 }
 0x8dc   :  { %627 = vrot.lane.b32.xlu0 %v625_v56, %s1294_s11 }
 0x8e0   :  { %130 = vperm.xlu0 %1246, %v128_v57  }
 0x8e8   :  { %v124_v59 = vpop.permute.xlu1 %123 }
 0x8e9   :  { %vm125_vm10 = vcmp.eq.s32.totalorder %v124_v59, 1 }
 0x8ea   :  { %v126_v61 = vsel %vm125_vm10, %v1372_v13, %v1377_v14 }
 0x94e   :  { %v628_v58 = vpop.permute.xlu0 %627 }
 0x94f   :  { %1150 = vmatmul.mubr.msk.f32.vlgmr.msra.gmra.mrb[4].mxu1 %vm166_vm7, %v628_v58 }
 0x950   :  { %1229 = vmatpush3.bf16.msra.mxu1 %v1337_v5  ;;  %1171 = vmatprep.mubr.msk.f32.mxu1 %vm1289_vm0, %v1290_v4 }
 0x951   :  { %1230 = vmatprep.subr.bf16.mxu1 %v1288_v0 }
 0x954   :  { %1232 = vmatpush3.bf16.msra.mxu1 %v1351_v9  ;;  %v1022_v9 = vld [vmem:[%s1527_s0 + $0x30] sm:$0xff] }
 0x955   :  { %vm136_vm12 = vcmp.eq.s32.totalorder %v1022_v9, 1  ;;  %vm143_vm13 = vcmp.eq.s32.totalorder %v1022_v9, 0 }
 0x956   :  { %v137_v10 = vsel %vm136_vm12, 1, %v1291_v7  ;;  %v144_v19 = vsel %vm143_vm13, 1, %v1291_v7 }
 0x95f   :  { %v131_v60 = vpop.permute.xlu0 %130 }
 0x960   :  { %vm132_vm11 = vcmp.eq.s32.totalorder %v131_v60, 1 }
 0x961   :  { %v133_v62 = vsel %vm132_vm11, %v1384_v17, %v126_v61 }
 0xa22   :  { %v697_v63 = vpop.f32.mrb[4].mxu1 }
 0xa23   :  { %v701_v1 = vadd.f32 %v697_v63, %v133_v62  ;;  %v1151_v2 = vpop.f32.mrb[5].mxu1  ;;  %v1039_v62 = vld [vmem:[%s1530_s4] ss:$0 sm:$0xff] }
 0xa24   :  { %v994_v2 = vlaneseq }
 0xa25   :  { %v1034_v5 = vmul.f32 -1.442695, %v701_v1 }
 0xa27   :  { %1268 = vpow2.f32 %v1034_v5  ;;  %v995_v5 = vand.u32 127, %v994_v2 }
 0xa29   :  { %vm996_vm4 = vcmp.lt.s32.totalorder %v995_v5, 10 }
 0xa31   :  { %v1269_v3 = vpop.eup %1268 }
 0xa32   :  { %v705_v6 = vadd.f32 1.0, %v1269_v3 }
 0xa34   :  { %1270 = vrcp.f32 %v705_v6 }
 0xa3e   :  { %v1271_v8 = vpop.eup %1270 }
 0xa3f   :  { %713 = vrot.lane.b32.xlu0 %v1271_v8, %s1293_s1  ;;  %709 = vrot.lane.b32.xlu1 %v1271_v8, %s1292_s10 }
 0xa43   :  { %139 = vperm.xlu0 %1246, %v137_v10  }
 0xab1   :  { %v714_v11 = vpop.permute.xlu0 %713  ;;  %v710_v12 = vpop.permute.xlu1 %709 }
 0xab2   :  { %v716_v15 = vmul.f32 %v714_v11, %v625_v56  ;;  %v712_v16 = vmul.f32 %v1271_v8, %v710_v12 }
 0xab4   :  { %v717_v18 = vadd.f32 %v716_v15, %v712_v16 }
 0xab6   :  { %719 = vrot.lane.b32.xlu1 %v717_v18, %s1294_s11 }
 0xaba   :  { %146 = vperm.xlu1 %1247, %v144_v19  }
 0xac2   :  { %v140_v21 = vpop.permute.xlu0 %139 }
 0xac3   :  { %vm141_vm14 = vcmp.eq.s32.totalorder %v140_v21, 1 }
 0xac4   :  { %v142_v23 = vsel %vm141_vm14, %v1372_v13, %v1377_v14 }
 0xb28   :  { %v720_v20 = vpop.permute.xlu1 %719 }
 0xb29   :  { %1161 = vmatmul.mubr.msk.f32.vlgmr.msra.gmra.mrb[6].mxu0 %vm166_vm7, %v720_v20 }
 0xb2a   :  { %1182 = vmatprep.mubr.msk.f32.mxu0 %vm1289_vm0, %v1290_v4  ;;  %v1023_v4 = vld [vmem:[%s1527_s0 + $0x38] sm:$0xff] }
 0xb2b   :  { %vm152_vm0 = vcmp.eq.s32.totalorder %v1023_v4, 1  ;;  %vm159_vm1 = vcmp.eq.s32.totalorder %v1023_v4, 0 }
 0xb2c   :  { %v153_v32 = vsel %vm152_vm0, 1, %v1291_v7  ;;  %v160_v38 = vsel %vm159_vm1, 1, %v1291_v7 }
 0xb39   :  { %v147_v22 = vpop.permute.xlu1 %146 }
 0xb3a   :  { %vm148_vm15 = vcmp.eq.s32.totalorder %v147_v22, 1 }
 0xb3b   :  { %v149_v24 = vsel %vm148_vm15, %v1384_v17, %v142_v23 }
 0xbfc   :  { %v789_v25 = vpop.f32.mrb[6].mxu0 }
 0xbfd   :  { %v793_v26 = vadd.f32 %v789_v25, %v149_v24  ;;  %v1162_v27 = vpop.f32.mrb[7].mxu0 }
 0xbff   :  { %v1036_v28 = vmul.f32 -1.442695, %v793_v26 }
 0xc01   :  { %1272 = vpow2.f32 %v1036_v28 }
 0xc0b   :  { %v1273_v29 = vpop.eup %1272 }
 0xc0c   :  { %v797_v30 = vadd.f32 1.0, %v1273_v29 }
 0xc0e   :  { %1274 = vrcp.f32 %v797_v30 }
 0xc18   :  { %v1275_v31 = vpop.eup %1274 }
 0xc19   :  { %805 = vrot.lane.b32.xlu1 %v1275_v31, %s1293_s1  ;;  %801 = vrot.lane.b32.xlu0 %v1275_v31, %s1292_s10 }
 0xc1d   :  { %155 = vperm.xlu1 %1247, %v153_v32  }
 0xc8b   :  { %v806_v33 = vpop.permute.xlu1 %805  ;;  %v802_v34 = vpop.permute.xlu0 %801 }
 0xc8c   :  { %v808_v35 = vmul.f32 %v806_v33, %v717_v18  ;;  %v804_v36 = vmul.f32 %v1275_v31, %v802_v34 }
 0xc8e   :  { %v809_v37 = vadd.f32 %v808_v35, %v804_v36 }
 0xc90   :  { %811 = vrot.lane.b32.xlu0 %v809_v37, %s1294_s11 }
 0xc94   :  { %162 = vperm.xlu0 %1246, %v160_v38  }
 0xc9c   :  { %v156_v40 = vpop.permute.xlu1 %155 }
 0xc9d   :  { %vm157_vm2 = vcmp.eq.s32.totalorder %v156_v40, 1 }
 0xc9e   :  { %v158_v42 = vsel %vm157_vm2, %v1372_v13, %v1377_v14  ;;  %v907_v13 = vld [vmem:[%s1529_s3] sm:$0xff]  ;;  %v908_v14 = vld [vmem:[%s1529_s3 + $0x8] sm:$0xff] }
 0xc9f   :  { %v1234_v50 = vpack.c.bf16 %v908_v14, %v907_v13 }
 0xca1   :  { %1235 = vmatpush3.bf16.msra.mxu0 %v1234_v50 }
 0xca2   :  { %1236 = vmatprep.subr.bf16.mxu0 %v1288_v0 }
 0xd02   :  { %v812_v39 = vpop.permute.xlu0 %811 }
 0xd03   :  { %1172 = vmatmul.mubr.msk.f32.vlgmr.msra.gmra.mrb[6].mxu1 %vm166_vm7, %v812_v39 }
 0xd13   :  { %v163_v41 = vpop.permute.xlu0 %162 }
 0xd14   :  { %vm164_vm3 = vcmp.eq.s32.totalorder %v163_v41, 1 }
 0xd15   :  { %v165_v43 = vsel %vm164_vm3, %v1384_v17, %v158_v42  ;;  %v909_v17 = vld [vmem:[%s1529_s3 + $0x10] sm:$0xff] }
 0xd16   :  { %v1237_v52 = vpack.c.bf16 %v910_v51, %v909_v17 }
 0xd18   :  { %1238 = vmatpush3.bf16.msra.mxu0 %v1237_v52 }
 0xdd6   :  { %v881_v44 = vpop.f32.mrb[6].mxu1 }
 0xdd7   :  { %v885_v45 = vadd.f32 %v881_v44, %v165_v43  ;;  %v1173_v46 = vpop.f32.mrb[7].mxu1 }
 0xdd9   :  { %v1038_v47 = vmul.f32 -1.442695, %v885_v45 }
 0xddb   :  { %1276 = vpow2.f32 %v1038_v47 }
 0xde5   :  { %v1277_v48 = vpop.eup %1276 }
 0xde6   :  { %v889_v7 = vadd.f32 1.0, %v1277_v48 }
 0xde8   :  { %1278 = vrcp.f32 %v889_v7 }
 0xdf2   :  { %v1279_v49 = vpop.eup %1278 }
 0xdf3   :  { %897 = vrot.lane.b32.xlu0 %v1279_v49, %s1293_s1  ;;  %893 = vrot.lane.b32.xlu1 %v1279_v49, %s1292_s10 }
 0xdf7   :  { %903 = vrot.lane.b32.xlu1 %v1279_v49, %s1294_s11 }
 0xe65   :  { %v898_v53 = vpop.permute.xlu0 %897  ;;  %v894_v54 = vpop.permute.xlu1 %893 }
 0xe66   :  { %v900_v55 = vmul.f32 %v898_v53, %v809_v37  ;;  %v896_v56 = vmul.f32 %v1279_v49, %v894_v54 }
 0xe68   :  { %v901_v57 = vadd.f32 %v900_v55, %v896_v56 }
 0xe69   :  { %v904_v59 = vpop.permute.xlu1 %903 }
 0xe6a   :  { %1280 = vtanh.f32 %v901_v57 }
 0xe74   :  { %v1281_v58 = vpop.eup %1280 }
 0xe75   :  { %v906_v60 = vmul.f32 %v1281_v58, %v904_v59 }
 0xe77   :  { %919 = vrot.lane.b32.xlu0 %v906_v60, %s1294_s11 }
 0xee9   :  { %v920_v61 = vpop.permute.xlu0 %919 }
 0xeea   :  { %1183 = vmatmul.mubr.msk.f32.vlgmr.msra.gmra.mrb[8].mxu0 %vm166_vm7, %v920_v61 }
 0xfbd   :  { %v989_v0 = vpop.f32.mrb[8].mxu0 }
 0xfbe   :  { %v990_v63 = vadd.f32 %v1039_v62, %v989_v0  ;;  %v1184_v1 = vpop.f32.mrb[9].mxu0 }
 0xfc0   :  { %1282 = vtanh.f32 %v990_v63 }
 0xfca   :  { %v1283_v3 = vpop.eup %1282 }
 0xfcb   :  { %v997_v6 = vsel %vm996_vm4, %v1283_v3, -1e+30 }
 0xfcc   :  { %998 = vmax.xlane.f32.xlu1 %v997_v6 }
0x1059   :  { %v999_v9 = vpop.xlane.xlu1 %998 }
0x105a   :  { %v1000_v8 = vsub.f32 %v997_v6, %v999_v9 }
0x105c   :  { %v1001_v10 = vmul.f32 1.442695, %v1000_v8 }
0x105e   :  { %1284 = vpow2.f32 %v1001_v10 }
0x1068   :  { %v1285_v11 = vpop.eup %1284 }
0x1069   :  { %1003 = vadd.xlane.f32.xlu0 %v1285_v11 }
0x10f6   :  { %v1004_v12 = vpop.xlane.xlu0 %1003 }
0x10f7   :  { %1286 = vlog2.f32 %v1004_v12 }
0x1101   :  { %v1287_v15 = vpop.eup %1286 }
0x1102   :  { %v1006_v16 = vmul.f32 0.6931472, %v1287_v15 }
0x1104   :  { %v1007_v18 = vadd.f32 %v1006_v16, %v999_v9 }
0x1106   :  { %v1008_v19 = vsub.f32 %v997_v6, %v1007_v18 }
0x1108   :  { %1009 = vst [vmem:[%s1531_s5] sm:$0xff] %v1008_v19 }

</bundles_post_ra>
